<compile_context>
chip_gen: v7x
topology: tpu7x:2x2x1
jax: 0.10.0
libtpu: 0.0.40
codegen_flags: <defaults>
</compile_context>

<pallas_src>
import jax
import jax.numpy as jnp
from jax.experimental import pallas as pl
from jax.experimental.pallas import tpu as pltpu


def ffn_kernel(x_ref, w1_ref, b1_ref, w2_ref, b2_ref, g_ref, beta_ref, o_ref):
    x = x_ref[...].astype(jnp.float32)                       # (TM, D)

    # --- LayerNorm over last dim (biased variance, eps inside rsqrt, affine), f32 ---
    mean = jnp.mean(x, axis=-1, keepdims=True)
    cen = x - mean
    var = jnp.mean(cen * cen, axis=-1, keepdims=True)
    xn = cen * jax.lax.rsqrt(var + 1e-5)
    xn = xn * g_ref[...] + beta_ref[...]                     # (TM, D), f32

    # --- linear1 -> ReLU -> linear2 on the MXU (bf16 operands, f32 accumulation) ---
    h = jnp.dot(xn.astype(jnp.bfloat16), w1_ref[...],
                preferred_element_type=jnp.float32) + b1_ref[...]
    h = jnp.maximum(h, 0.0).astype(jnp.bfloat16)             # fused ReLU + cast
    y = jnp.dot(h, w2_ref[...],
                preferred_element_type=jnp.float32) + b2_ref[...]

    # --- residual with the NORMED input (exactly what forward_pre computes) ---
    o_ref[...] = (xn + y).astype(o_ref.dtype)


def _round_up(x, m):
    return ((x + m - 1) // m) * m


def _tpu_vmem_capacity_and_two_tc():
    """Best-effort: per-TensorCore VMEM bytes and whether the chip has 2 TCs (v7x)."""
    vmem_cap = 128 * 1024 * 1024
    kind = ""
    try:
        kind = jax.devices()[0].device_kind.lower()
    except Exception:
        pass
    try:
        info = pltpu.get_tpu_info()
        vmem_cap = int(getattr(info, "vmem_capacity_bytes", vmem_cap))
    except Exception:
        pass
    is_v7 = "7" in kind
    if is_v7:
        vmem_cap = min(vmem_cap, 64 * 1024 * 1024)
    two_tc = is_v7 or (vmem_cap <= 96 * 1024 * 1024)
    return vmem_cap, two_tc


def _vmem_estimate(tile_m, D, F, io_itemsize):
    # Weights counted double-buffered for headroom even though we request
    # Buffered(1); biases / LN params are tiny.
    weights = 2 * (D * F + F * D) * 2                  # bf16 W1 + W2
    biases = (F + 3 * D) * 4
    io = 2 * tile_m * D * io_itemsize * 2              # x + out tiles, 2 buffers each
    interm = tile_m * D * (4 + 2)                      # xn f32 + bf16 copy
    interm += tile_m * F * (4 + 2)                     # h  f32 + bf16 copy
    interm += tile_m * D * 4                           # y  f32
    return weights + biases + io + interm


def _build_in_specs(tile_m, D, F, single_buffer):
    def resident(shape):
        # Grid-invariant operand: constant index_map; single-buffer if supported.
        if single_buffer:
            return pl.BlockSpec(shape, lambda i: (0, 0),
                                pipeline_mode=pl.Buffered(1))
        return pl.BlockSpec(shape, lambda i: (0, 0))

    return [
        pl.BlockSpec((tile_m, D), lambda i: (i, 0)),   # x rows (streamed)
        resident((D, F)),                              # W1 (bf16, resident)
        resident((1, F)),                              # b1
        resident((F, D)),                              # W2 (bf16, resident)
        resident((1, D)),                              # b2
        resident((1, D)),                              # gamma
        resident((1, D)),                              # beta
    ]


def ffn_layer(memory, w1, b1, w2, b2, gamma, beta, *, tile_m=None):
    """memory: (seq, batch, d_model).  w1: (d_model, dff), w2: (dff, d_model).

    Weights are stored (in, out); the kernel computes x @ W == x @ W_pt.T.
    memory may be f32 or bf16; the output keeps memory's dtype (pass bf16 to
    halve the per-step activation HBM traffic).
    """
    S, B, D = memory.shape
    F = w1.shape[1]
    M = S * B
    io_itemsize = jnp.dtype(memory.dtype).itemsize

    vmem_cap, two_tc = _tpu_vmem_capacity_and_two_tc()
    budget = int(vmem_cap * 0.75)                           # ~48 MiB v7x, ~96 MiB v5e/v6e
    limit_cap = min(int(vmem_cap * 0.875), 100 * 1024 * 1024)

    if tile_m is None:
        tile_m = 512 if two_tc else 1024                    # v7x: 64 MiB/core, 2 TCs

    # ---- row-tile selection: MXU-friendly 256 alignment for large M, sublane
    # alignment otherwise (16 for sub-32-bit activations); shrink under the VMEM
    # budget; on v7x clamp so the parallel grid has >= 2 steps (one per TC). ----
    align = 256 if M >= 256 else (8 if io_itemsize >= 4 else 16)
    tile_m = _round_up(max(1, min(tile_m, M)), align)
    while tile_m > align and _vmem_estimate(tile_m, D, F, io_itemsize) > budget:
        tile_m = max(align, _round_up(tile_m // 2, align))
    if two_tc and M >= 2 * align:
        tile_m = min(tile_m, max(align, (M // 2) // align * align))

    # ---- ragged M: pad rows.  Zero rows give var=0 -> rsqrt(1e-5): finite, and
    # they are sliced off below, so keep the [:M] slice. ----
    M_pad = _round_up(M, tile_m)
    x2d = memory.reshape(M, D)
    if M_pad != M:
        x2d = jnp.pad(x2d, ((0, M_pad - M), (0, 0)))

    # bf16 weights (MXU-native, halves resident VMEM / HBM fill); LN params and
    # biases stay f32.
    w1b = w1.astype(jnp.bfloat16)
    w2b = w2.astype(jnp.bfloat16)
    b1_2d = b1.reshape(1, F).astype(jnp.float32)
    b2_2d = b2.reshape(1, D).astype(jnp.float32)
    g_2d = gamma.reshape(1, D).astype(jnp.float32)
    beta_2d = beta.reshape(1, D).astype(jnp.float32)

    est = _vmem_estimate(tile_m, D, F, io_itemsize)
    vmem_limit = int(min(limit_cap, max(32 * 1024 * 1024, est * 3 // 2)))
    grid = (M_pad // tile_m,)

    def run(single_buffer):
        return pl.pallas_call(
            ffn_kernel,
            out_shape=jax.ShapeDtypeStruct((M_pad, D), memory.dtype),
            grid_spec=pltpu.PrefetchScalarGridSpec(
                num_scalar_prefetch=0,
                grid=grid,
                in_specs=_build_in_specs(tile_m, D, F, single_buffer),
                out_specs=pl.BlockSpec((tile_m, D), lambda i: (i, 0)),
            ),
            compiler_params=pltpu.CompilerParams(
                dimension_semantics=("parallel",),
                vmem_limit_bytes=vmem_limit,
            ),
        )(x2d, w1b, b1_2d, w2b, b2_2d, g_2d, beta_2d)

    try:
        out2d = run(single_buffer=True)      # single-buffer the resident weights
    except Exception:
        out2d = run(single_buffer=False)     # fallback: default double buffering

    return out2d[:M].reshape(S, B, D)


# ---------------- references ----------------

def ffn_reference_f32(memory, w1, b1, w2, b2, gamma, beta):
    x = memory.astype(jnp.float32)
    mean = jnp.mean(x, axis=-1, keepdims=True)
    var = jnp.mean((x - mean) ** 2, axis=-1, keepdims=True)
    xn = (x - mean) * jax.lax.rsqrt(var + 1e-5) * gamma + beta
    h = jnp.maximum(xn @ w1 + b1, 0.0)
    y = h @ w2 + b2
    return (xn + y).astype(memory.dtype)


def ffn_reference_bf16_mxu(memory, w1, b1, w2, b2, gamma, beta):
    """Mirrors the kernel's dtype strategy: f32 LN, bf16 matmul operands, f32 accum."""
    x = memory.astype(jnp.float32)
    mean = jnp.mean(x, axis=-1, keepdims=True)
    var = jnp.mean((x - mean) ** 2, axis=-1, keepdims=True)
    xn = (x - mean) * jax.lax.rsqrt(var + 1e-5) * gamma + beta
    h = jnp.einsum("sbd,df->sbf", xn.astype(jnp.bfloat16), w1.astype(jnp.bfloat16),
                   preferred_element_type=jnp.float32) + b1
    h = jnp.maximum(h, 0.0)
    y = jnp.einsum("sbf,fd->sbd", h.astype(jnp.bfloat16), w2.astype(jnp.bfloat16),
                   preferred_element_type=jnp.float32) + b2
    return (xn + y).astype(memory.dtype)


if __name__ == "__main__":
    # Small but lane-dense shapes consistent with FFNLayer in V-DETR
    # (d_model multiple of 128; dim_feedforward=256 is the module default).
    S, B, D, FF = 8, 2, 128, 256

    key = jax.random.PRNGKey(0)
    k_mem, k_w1, k_b1, k_w2, k_b2, k_g, k_beta, k_mem2 = jax.random.split(key, 8)

    memory = jax.random.normal(k_mem, (S, B, D), dtype=jnp.float32)
    w1 = jax.random.normal(k_w1, (D, FF), dtype=jnp.float32) * 0.05
    b1 = jax.random.normal(k_b1, (FF,), dtype=jnp.float32) * 0.05
    w2 = jax.random.normal(k_w2, (FF, D), dtype=jnp.float32) * 0.05
    b2 = jax.random.normal(k_b2, (D,), dtype=jnp.float32) * 0.05
    gamma = jnp.ones((D,), dtype=jnp.float32) + 0.01 * jax.random.normal(k_g, (D,))
    beta = 0.01 * jax.random.normal(k_beta, (D,), dtype=jnp.float32)

    out = jax.block_until_ready(ffn_layer(memory, w1, b1, w2, b2, gamma, beta))
    assert out.shape == (S, B, D)

    ref_mxu = ffn_reference_bf16_mxu(memory, w1, b1, w2, b2, gamma, beta)
    ref_f32 = ffn_reference_f32(memory, w1, b1, w2, b2, gamma, beta)
    assert jnp.allclose(out, ref_mxu, atol=2e-3, rtol=2e-3), "mismatch vs bf16-MXU reference"
    assert jnp.allclose(out, ref_f32, atol=5e-2, rtol=5e-2), "mismatch vs f32 reference"

    # Ragged seq*batch (M=21) with a small forced tile -> exercises padding and a
    # multi-step parallel grid (shards across the 2 TCs on v7x).
    memory2 = jax.random.normal(k_mem2, (7, 3, D), dtype=jnp.float32)
    out2 = jax.block_until_ready(
        ffn_layer(memory2, w1, b1, w2, b2, gamma, beta, tile_m=16))
    ref2 = ffn_reference_bf16_mxu(memory2, w1, b1, w2, b2, gamma, beta)
    assert out2.shape == (7, 3, D)
    assert jnp.allclose(out2, ref2, atol=2e-3, rtol=2e-3), "mismatch on ragged M"

    # bf16 activations: x/out stream at half the HBM traffic; LN math stays f32.
    memory_bf16 = memory.astype(jnp.bfloat16)
    out3 = jax.block_until_ready(ffn_layer(memory_bf16, w1, b1, w2, b2, gamma, beta))
    ref3 = ffn_reference_bf16_mxu(memory_bf16, w1, b1, w2, b2, gamma, beta)
    assert out3.dtype == jnp.bfloat16
    assert jnp.allclose(out3.astype(jnp.float32), ref3.astype(jnp.float32),
                        atol=5e-2, rtol=5e-2), "mismatch on bf16 activations"

    print("KERNEL_OK")
</pallas_src>

<mosaic_0001>
module attributes {stable_mosaic.version = 11 : i64} {
  func.func @ffn_kernel(%arg0: i32, %arg1: memref<16x128xf32, #tpu.memory_space<vmem>>, %arg2: memref<128x256xbf16, #tpu.memory_space<vmem>>, %arg3: memref<1x256xf32, #tpu.memory_space<vmem>>, %arg4: memref<256x128xbf16, #tpu.memory_space<vmem>>, %arg5: memref<1x128xf32, #tpu.memory_space<vmem>>, %arg6: memref<1x128xf32, #tpu.memory_space<vmem>>, %arg7: memref<1x128xf32, #tpu.memory_space<vmem>>, %arg8: memref<16x128xf32, #tpu.memory_space<vmem>>) attributes {dimension_semantics = [#tpu.dimension_semantics<parallel>], iteration_bounds = array<i64: 1>, scalar_prefetch = 0 : i64, scratch_operands = 0 : i64, tpu.core_type = #tpu.core_type<tc>, window_params = [{transform_indices = @transform_0, window_bounds = array<i64: 16, 128>}, {pipeline_mode = #tpu.pipeline_mode<synchronous>, transform_indices = @transform_1, window_bounds = array<i64: 128, 256>}, {pipeline_mode = #tpu.pipeline_mode<synchronous>, transform_indices = @transform_2, window_bounds = array<i64: 1, 256>}, {pipeline_mode = #tpu.pipeline_mode<synchronous>, transform_indices = @transform_3, window_bounds = array<i64: 256, 128>}, {pipeline_mode = #tpu.pipeline_mode<synchronous>, transform_indices = @transform_4, window_bounds = array<i64: 1, 128>}, {pipeline_mode = #tpu.pipeline_mode<synchronous>, transform_indices = @transform_5, window_bounds = array<i64: 1, 128>}, {pipeline_mode = #tpu.pipeline_mode<synchronous>, transform_indices = @transform_6, window_bounds = array<i64: 1, 128>}, {transform_indices = @transform_7, window_bounds = array<i64: 16, 128>}]} {
    %c0 = arith.constant 0 : index
    %c0_0 = arith.constant 0 : index
    %0 = vector.load %arg1[%c0, %c0_0] : memref<16x128xf32, #tpu.memory_space<vmem>>, vector<16x128xf32>
    %cst = arith.constant dense<0.000000e+00> : vector<16xf32>
    %1 = vector.multi_reduction <add>, %0, %cst [1] : vector<16x128xf32> to vector<16xf32>
    %2 = vector.shape_cast %1 : vector<16xf32> to vector<16x1xf32>
    %cst_1 = arith.constant 1.280000e+02 : f32
    %3 = vector.broadcast %cst_1 : f32 to vector<16x1xf32>
    %4 = arith.divf %2, %3 : vector<16x1xf32>
    %5 = vector.broadcast %4 : vector<16x1xf32> to vector<16x128xf32>
    %6 = arith.subf %0, %5 : vector<16x128xf32>
    %7 = arith.mulf %6, %6 : vector<16x128xf32>
    %cst_2 = arith.constant dense<0.000000e+00> : vector<16xf32>
    %8 = vector.multi_reduction <add>, %7, %cst_2 [1] : vector<16x128xf32> to vector<16xf32>
    %9 = vector.shape_cast %8 : vector<16xf32> to vector<16x1xf32>
    %cst_3 = arith.constant 1.280000e+02 : f32
    %10 = vector.broadcast %cst_3 : f32 to vector<16x1xf32>
    %11 = arith.divf %9, %10 : vector<16x1xf32>
    %cst_4 = arith.constant 9.99999974E-6 : f32
    %12 = vector.broadcast %cst_4 : f32 to vector<16x1xf32>
    %13 = arith.addf %11, %12 : vector<16x1xf32>
    %14 = math.rsqrt %13 : vector<16x1xf32>
    %15 = vector.broadcast %14 : vector<16x1xf32> to vector<16x128xf32>
    %16 = arith.mulf %6, %15 : vector<16x128xf32>
    %c0_5 = arith.constant 0 : index
    %c0_6 = arith.constant 0 : index
    %17 = vector.load %arg6[%c0_5, %c0_6] : memref<1x128xf32, #tpu.memory_space<vmem>>, vector<1x128xf32>
    %18 = vector.broadcast %17 : vector<1x128xf32> to vector<16x128xf32>
    %19 = arith.mulf %16, %18 : vector<16x128xf32>
    %c0_7 = arith.constant 0 : index
    %c0_8 = arith.constant 0 : index
    %20 = vector.load %arg7[%c0_7, %c0_8] : memref<1x128xf32, #tpu.memory_space<vmem>>, vector<1x128xf32>
    %21 = vector.broadcast %20 : vector<1x128xf32> to vector<16x128xf32>
    %22 = arith.addf %19, %21 : vector<16x128xf32>
    %23 = arith.truncf %22 : vector<16x128xf32> to vector<16x128xbf16>
    %c0_9 = arith.constant 0 : index
    %c0_10 = arith.constant 0 : index
    %24 = vector.load %arg2[%c0_9, %c0_10] : memref<128x256xbf16, #tpu.memory_space<vmem>>, vector<128x256xbf16>
    %cst_11 = arith.constant dense<0.000000e+00> : vector<16x256xf32>
    %25 = tpu.matmul %23, %24, %cst_11 {dimension_numbers = #tpu.dot_dimension_numbers<[1], [0], [0], [1], [0, 0, 1, 1], [], []>} : vector<16x128xbf16>, vector<128x256xbf16>, vector<16x256xf32> -> vector<16x256xf32>
    %c0_12 = arith.constant 0 : index
    %c0_13 = arith.constant 0 : index
    %26 = vector.load %arg3[%c0_12, %c0_13] : memref<1x256xf32, #tpu.memory_space<vmem>>, vector<1x256xf32>
    %27 = vector.broadcast %26 : vector<1x256xf32> to vector<16x256xf32>
    %28 = arith.addf %25, %27 : vector<16x256xf32>
    %cst_14 = arith.constant 0.000000e+00 : f32
    %29 = vector.broadcast %cst_14 : f32 to vector<16x256xf32>
    %30 = arith.maximumf %28, %29 : vector<16x256xf32>
    %31 = arith.truncf %30 : vector<16x256xf32> to vector<16x256xbf16>
    %c0_15 = arith.constant 0 : index
    %c0_16 = arith.constant 0 : index
    %32 = vector.load %arg4[%c0_15, %c0_16] : memref<256x128xbf16, #tpu.memory_space<vmem>>, vector<256x128xbf16>
    %cst_17 = arith.constant dense<0.000000e+00> : vector<16x128xf32>
    %33 = tpu.matmul %31, %32, %cst_17 {dimension_numbers = #tpu.dot_dimension_numbers<[1], [0], [0], [1], [0, 0, 1, 1], [], []>} : vector<16x256xbf16>, vector<256x128xbf16>, vector<16x128xf32> -> vector<16x128xf32>
    %c0_18 = arith.constant 0 : index
    %c0_19 = arith.constant 0 : index
    %34 = vector.load %arg5[%c0_18, %c0_19] : memref<1x128xf32, #tpu.memory_space<vmem>>, vector<1x128xf32>
    %35 = vector.broadcast %34 : vector<1x128xf32> to vector<16x128xf32>
    %36 = arith.addf %33, %35 : vector<16x128xf32>
    %37 = arith.addf %22, %36 : vector<16x128xf32>
    %c0_20 = arith.constant 0 : index
    %c0_21 = arith.constant 0 : index
    %38 = vector.load %arg8[%c0_20, %c0_21] : memref<16x128xf32, #tpu.memory_space<vmem>>, vector<16x128xf32>
    tpu.vector_store %arg8[%c0_20, %c0_21], %37 {strides = array<i32>} : memref<16x128xf32, #tpu.memory_space<vmem>>, vector<16x128xf32>,
    return
  }
  func.func @transform_0(%arg0: i32) -> (i32, i32) {
    %c0_i32 = arith.constant 0 : i32
    %c0_i32_0 = arith.constant 0 : i32
    return %arg0, %c0_i32 : i32, i32
  }
  func.func @transform_1(%arg0: i32) -> (i32, i32) {
    %c0_i32 = arith.constant 0 : i32
    %c0_i32_0 = arith.constant 0 : i32
    %c0_i32_1 = arith.constant 0 : i32
    return %c0_i32, %c0_i32_0 : i32, i32
  }
  func.func @transform_2(%arg0: i32) -> (i32, i32) {
    %c0_i32 = arith.constant 0 : i32
    %c0_i32_0 = arith.constant 0 : i32
    %c0_i32_1 = arith.constant 0 : i32
    return %c0_i32, %c0_i32_0 : i32, i32
  }
  func.func @transform_3(%arg0: i32) -> (i32, i32) {
    %c0_i32 = arith.constant 0 : i32
    %c0_i32_0 = arith.constant 0 : i32
    %c0_i32_1 = arith.constant 0 : i32
    return %c0_i32, %c0_i32_0 : i32, i32
  }
  func.func @transform_4(%arg0: i32) -> (i32, i32) {
    %c0_i32 = arith.constant 0 : i32
    %c0_i32_0 = arith.constant 0 : i32
    %c0_i32_1 = arith.constant 0 : i32
    return %c0_i32, %c0_i32_0 : i32, i32
  }
  func.func @transform_5(%arg0: i32) -> (i32, i32) {
    %c0_i32 = arith.constant 0 : i32
    %c0_i32_0 = arith.constant 0 : i32
    %c0_i32_1 = arith.constant 0 : i32
    return %c0_i32, %c0_i32_0 : i32, i32
  }
  func.func @transform_6(%arg0: i32) -> (i32, i32) {
    %c0_i32 = arith.constant 0 : i32
    %c0_i32_0 = arith.constant 0 : i32
    %c0_i32_1 = arith.constant 0 : i32
    return %c0_i32, %c0_i32_0 : i32, i32
  }
  func.func @transform_7(%arg0: i32) -> (i32, i32) {
    %c0_i32 = arith.constant 0 : i32
    %c0_i32_0 = arith.constant 0 : i32
    return %arg0, %c0_i32 : i32, i32
  }
}

module attributes {stable_mosaic.version = 11 : i64} {
  func.func @ffn_kernel(%arg0: i32, %arg1: memref<16x128xf32, #tpu.memory_space<vmem>>, %arg2: memref<128x256xbf16, #tpu.memory_space<vmem>>, %arg3: memref<1x256xf32, #tpu.memory_space<vmem>>, %arg4: memref<256x128xbf16, #tpu.memory_space<vmem>>, %arg5: memref<1x128xf32, #tpu.memory_space<vmem>>, %arg6: memref<1x128xf32, #tpu.memory_space<vmem>>, %arg7: memref<1x128xf32, #tpu.memory_space<vmem>>, %arg8: memref<16x128xf32, #tpu.memory_space<vmem>>) attributes {dimension_semantics = [#tpu.dimension_semantics<parallel>], iteration_bounds = array<i64: 1>, scalar_prefetch = 0 : i64, scratch_operands = 0 : i64, tpu.core_type = #tpu.core_type<tc>, window_params = [{transform_indices = @transform_0, window_bounds = array<i64: 16, 128>}, {pipeline_mode = #tpu.pipeline_mode<synchronous>, transform_indices = @transform_1, window_bounds = array<i64: 128, 256>}, {pipeline_mode = #tpu.pipeline_mode<synchronous>, transform_indices = @transform_2, window_bounds = array<i64: 1, 256>}, {pipeline_mode = #tpu.pipeline_mode<synchronous>, transform_indices = @transform_3, window_bounds = array<i64: 256, 128>}, {pipeline_mode = #tpu.pipeline_mode<synchronous>, transform_indices = @transform_4, window_bounds = array<i64: 1, 128>}, {pipeline_mode = #tpu.pipeline_mode<synchronous>, transform_indices = @transform_5, window_bounds = array<i64: 1, 128>}, {pipeline_mode = #tpu.pipeline_mode<synchronous>, transform_indices = @transform_6, window_bounds = array<i64: 1, 128>}, {transform_indices = @transform_7, window_bounds = array<i64: 16, 128>}]} {
    %c0 = arith.constant 0 : index
    %c0_0 = arith.constant 0 : index
    %0 = vector.load %arg1[%c0, %c0_0] : memref<16x128xf32, #tpu.memory_space<vmem>>, vector<16x128xf32>
    %cst = arith.constant dense<0.000000e+00> : vector<16xf32>
    %1 = vector.multi_reduction <add>, %0, %cst [1] : vector<16x128xf32> to vector<16xf32>
    %2 = vector.shape_cast %1 : vector<16xf32> to vector<16x1xf32>
    %cst_1 = arith.constant 1.280000e+02 : f32
    %3 = vector.broadcast %cst_1 : f32 to vector<16x1xf32>
    %4 = arith.divf %2, %3 : vector<16x1xf32>
    %5 = vector.broadcast %4 : vector<16x1xf32> to vector<16x128xf32>
    %6 = arith.subf %0, %5 : vector<16x128xf32>
    %7 = arith.mulf %6, %6 : vector<16x128xf32>
    %cst_2 = arith.constant dense<0.000000e+00> : vector<16xf32>
    %8 = vector.multi_reduction <add>, %7, %cst_2 [1] : vector<16x128xf32> to vector<16xf32>
    %9 = vector.shape_cast %8 : vector<16xf32> to vector<16x1xf32>
    %cst_3 = arith.constant 1.280000e+02 : f32
    %10 = vector.broadcast %cst_3 : f32 to vector<16x1xf32>
    %11 = arith.divf %9, %10 : vector<16x1xf32>
    %cst_4 = arith.constant 9.99999974E-6 : f32
    %12 = vector.broadcast %cst_4 : f32 to vector<16x1xf32>
    %13 = arith.addf %11, %12 : vector<16x1xf32>
    %14 = math.rsqrt %13 : vector<16x1xf32>
    %15 = vector.broadcast %14 : vector<16x1xf32> to vector<16x128xf32>
    %16 = arith.mulf %6, %15 : vector<16x128xf32>
    %c0_5 = arith.constant 0 : index
    %c0_6 = arith.constant 0 : index
    %17 = vector.load %arg6[%c0_5, %c0_6] : memref<1x128xf32, #tpu.memory_space<vmem>>, vector<1x128xf32>
    %18 = vector.broadcast %17 : vector<1x128xf32> to vector<16x128xf32>
    %19 = arith.mulf %16, %18 : vector<16x128xf32>
    %c0_7 = arith.constant 0 : index
    %c0_8 = arith.constant 0 : index
    %20 = vector.load %arg7[%c0_7, %c0_8] : memref<1x128xf32, #tpu.memory_space<vmem>>, vector<1x128xf32>
    %21 = vector.broadcast %20 : vector<1x128xf32> to vector<16x128xf32>
    %22 = arith.addf %19, %21 : vector<16x128xf32>
    %23 = arith.truncf %22 : vector<16x128xf32> to vector<16x128xbf16>
    %c0_9 = arith.constant 0 : index
    %c0_10 = arith.constant 0 : index
    %24 = vector.load %arg2[%c0_9, %c0_10] : memref<128x256xbf16, #tpu.memory_space<vmem>>, vector<128x256xbf16>
    %cst_11 = arith.constant dense<0.000000e+00> : vector<16x256xf32>
    %25 = tpu.matmul %23, %24, %cst_11 {dimension_numbers = #tpu.dot_dimension_numbers<[1], [0], [0], [1], [0, 0, 1, 1], [], []>} : vector<16x128xbf16>, vector<128x256xbf16>, vector<16x256xf32> -> vector<16x256xf32>
    %c0_12 = arith.constant 0 : index
    %c0_13 = arith.constant 0 : index
    %26 = vector.load %arg3[%c0_12, %c0_13] : memref<1x256xf32, #tpu.memory_space<vmem>>, vector<1x256xf32>
    %27 = vector.broadcast %26 : vector<1x256xf32> to vector<16x256xf32>
    %28 = arith.addf %25, %27 : vector<16x256xf32>
    %cst_14 = arith.constant 0.000000e+00 : f32
    %29 = vector.broadcast %cst_14 : f32 to vector<16x256xf32>
    %30 = arith.maximumf %28, %29 : vector<16x256xf32>
    %31 = arith.truncf %30 : vector<16x256xf32> to vector<16x256xbf16>
    %c0_15 = arith.constant 0 : index
    %c0_16 = arith.constant 0 : index
    %32 = vector.load %arg4[%c0_15, %c0_16] : memref<256x128xbf16, #tpu.memory_space<vmem>>, vector<256x128xbf16>
    %cst_17 = arith.constant dense<0.000000e+00> : vector<16x128xf32>
    %33 = tpu.matmul %31, %32, %cst_17 {dimension_numbers = #tpu.dot_dimension_numbers<[1], [0], [0], [1], [0, 0, 1, 1], [], []>} : vector<16x256xbf16>, vector<256x128xbf16>, vector<16x128xf32> -> vector<16x128xf32>
    %c0_18 = arith.constant 0 : index
    %c0_19 = arith.constant 0 : index
    %34 = vector.load %arg5[%c0_18, %c0_19] : memref<1x128xf32, #tpu.memory_space<vmem>>, vector<1x128xf32>
    %35 = vector.broadcast %34 : vector<1x128xf32> to vector<16x128xf32>
    %36 = arith.addf %33, %35 : vector<16x128xf32>
    %37 = arith.addf %22, %36 : vector<16x128xf32>
    %c0_20 = arith.constant 0 : index
    %c0_21 = arith.constant 0 : index
    %38 = vector.load %arg8[%c0_20, %c0_21] : memref<16x128xf32, #tpu.memory_space<vmem>>, vector<16x128xf32>
    tpu.vector_store %arg8[%c0_20, %c0_21], %37 {strides = array<i32>} : memref<16x128xf32, #tpu.memory_space<vmem>>, vector<16x128xf32>,
    return
  }
  func.func @transform_0(%arg0: i32) -> (i32, i32) {
    %c0_i32 = arith.constant 0 : i32
    %c0_i32_0 = arith.constant 0 : i32
    return %arg0, %c0_i32 : i32, i32
  }
  func.func @transform_1(%arg0: i32) -> (i32, i32) {
    %c0_i32 = arith.constant 0 : i32
    %c0_i32_0 = arith.constant 0 : i32
    %c0_i32_1 = arith.constant 0 : i32
    return %c0_i32, %c0_i32_0 : i32, i32
  }
  func.func @transform_2(%arg0: i32) -> (i32, i32) {
    %c0_i32 = arith.constant 0 : i32
    %c0_i32_0 = arith.constant 0 : i32
    %c0_i32_1 = arith.constant 0 : i32
    return %c0_i32, %c0_i32_0 : i32, i32
  }
  func.func @transform_3(%arg0: i32) -> (i32, i32) {
    %c0_i32 = arith.constant 0 : i32
    %c0_i32_0 = arith.constant 0 : i32
    %c0_i32_1 = arith.constant 0 : i32
    return %c0_i32, %c0_i32_0 : i32, i32
  }
  func.func @transform_4(%arg0: i32) -> (i32, i32) {
    %c0_i32 = arith.constant 0 : i32
    %c0_i32_0 = arith.constant 0 : i32
    %c0_i32_1 = arith.constant 0 : i32
    return %c0_i32, %c0_i32_0 : i32, i32
  }
  func.func @transform_5(%arg0: i32) -> (i32, i32) {
    %c0_i32 = arith.constant 0 : i32
    %c0_i32_0 = arith.constant 0 : i32
    %c0_i32_1 = arith.constant 0 : i32
    return %c0_i32, %c0_i32_0 : i32, i32
  }
  func.func @transform_6(%arg0: i32) -> (i32, i32) {
    %c0_i32 = arith.constant 0 : i32
    %c0_i32_0 = arith.constant 0 : i32
    %c0_i32_1 = arith.constant 0 : i32
    return %c0_i32, %c0_i32_0 : i32, i32
  }
  func.func @transform_7(%arg0: i32) -> (i32, i32) {
    %c0_i32 = arith.constant 0 : i32
    %c0_i32_0 = arith.constant 0 : i32
    return %arg0, %c0_i32 : i32, i32
  }
}

</mosaic_0001>

<bundles_post_ra>
// kernel: tpu_custom_call.1
= control target key start
LH: loop header
LB: loop body
LE: loop exit
PB: predicated region body
PF: predicated region fallthrough
CT: control target
= control target key end

     0   :  { %12 = vsyncpa [#allocation3], 0  ;;  %s807_s0 = inlined_call_operand.hbm [shape: f32[16,128], index: 0, kind: input, shape index: {}]   ;;  %s808_s1 = inlined_call_operand.hbm [shape: bf16[128,256], index: 1, kind: input, shape index: {}]   ;;  %s809_s2 = inlined_call_operand.vmem [shape: f32[1,256], index: 2, kind: input, shape index: {}]   ;;  %s810_s3 = inlined_call_operand.hbm [shape: bf16[256,128], index: 3, kind: input, shape index: {}]   ;;  %s811_s4 = inlined_call_operand.vmem [shape: f32[1,128], index: 4, kind: input, shape index: {}]   ;;  %s812_s5 = inlined_call_operand.vmem [shape: f32[1,128], index: 5, kind: input, shape index: {}]   ;;  %s813_s6 = inlined_call_operand.vmem [shape: f32[1,128], index: 6, kind: input, shape index: {}]   ;;  %s814_s7 = inlined_call_operand.hbm [shape: f32[16,128], index: 7, kind: output, shape index: {}]  }
   0x1   :  { %13 = vsyncpa [#allocation6], 0 }
   0x2   :  { %14 = vsyncpa [#allocation4], 0  ;;  %s672_s24 = smov [#allocation5]   ;;  %s673_s26 = smov [#allocation2]  }
   0x3   :  { %s32_s25 = sshll.u32 %s672_s24, 4  ;;  %s20_s27 = sshll.u32 %s673_s26, 4  ;;  %s33_s25 = int_to_ptr.vmem [resolvable:$true] %s32_s25  ;;  %s721_s27 = int_to_ptr.vmem [resolvable:$true] %s20_s27 }
   0x4   :  { %s578_s30 = scalar_lea.hbm %s808_s1, 2048 }
   0x5   :  { %p579_p0 = scmp.ne.s32.totalorder %s808_s1, %s578_s30  ;;  %p582_p1 = scmp.lt.u32.totalorder %s578_s30, %s808_s1 }
   0x7   :  { %p584_p2 = pnand %p582_p1, %p579_p0 }
   0x9   :  { %587 = shalt.err (!%p584_p2)
}
   0xa   :  { %s588_s12 = scalar_lea.vmem %s33_s25, 2048  ;;  %p593_p4 = scmp.lt.s32.totalorder %s33_s25, %s33_s25 }
   0xb   :  { %p589_p3 = scmp.ne.s32.totalorder %s33_s25, %s588_s12  ;;  %p594_p5 = scmp.lt.s32.totalorder %s588_s12, %s588_s12 }
   0xd   :  { %p595_p6 = por %p594_p5, %p593_p4 }
   0xf   :  { %p596_p7 = pnand %p595_p6, %p589_p3 }
  0x11   :  { %599 = shalt.err (!%p596_p7)
}
  0x12   :  { %s674_s13 = smov 128   ;;  %s675_s14 = smov 8  }
  0x13   :  { %38 = dma.hbm_to_vmem [thread:$0]  %s808_s1, 2048, %s33_s25, [#allocation6], %s674_s13, %s674_s13, %s675_s14  }
  0x14   :  { %s600_s19 = scalar_lea.hbm %s807_s0, 256 }
  0x15   :  { %p601_p8 = scmp.ne.s32.totalorder %s807_s0, %s600_s19  ;;  %p604_p9 = scmp.lt.u32.totalorder %s600_s19, %s807_s0 }
  0x17   :  { %p606_p10 = pnand %p604_p9, %p601_p8 }
  0x19   :  { %609 = shalt.err (!%p606_p10)
}
  0x1a   :  { %s610_s24 = scalar_lea.vmem %s721_s27, 256  ;;  %p615_p12 = scmp.lt.s32.totalorder %s721_s27, %s721_s27 }
  0x1b   :  { %p611_p11 = scmp.ne.s32.totalorder %s721_s27, %s610_s24  ;;  %p616_p13 = scmp.lt.s32.totalorder %s610_s24, %s610_s24 }
  0x1d   :  { %p617_p0 = por %p616_p13, %p615_p12 }
  0x1f   :  { %p618_p1 = pnand %p617_p0, %p611_p11 }
  0x21   :  { %621 = shalt.err (!%p618_p1)
}
  0x22   :  { %26 = dma.hbm_to_vmem [thread:$0]  %s807_s0, 256, %s721_s27, [#allocation3], %s674_s13, %s674_s13, %s675_s14  }
  0x23   :  { %s676_s26 = smov [#allocation7]   ;;  %s622_s8 = scalar_lea.hbm %s810_s3, 2048 }
  0x24   :  { %s46_s28 = sshll.u32 %s676_s26, 4  ;;  %p623_p2 = scmp.ne.s32.totalorder %s810_s3, %s622_s8  ;;  %s47_s28 = int_to_ptr.vmem [resolvable:$true] %s46_s28 }
  0x25   :  { %p626_p3 = scmp.lt.u32.totalorder %s622_s8, %s810_s3 }
  0x27   :  { %p628_p4 = pnand %p626_p3, %p623_p2 }
  0x29   :  { %631 = shalt.err (!%p628_p4)
}
  0x2a   :  { %s632_s15 = scalar_lea.vmem %s47_s28, 2048  ;;  %p637_p6 = scmp.lt.s32.totalorder %s47_s28, %s47_s28 }
  0x2b   :  { %p633_p5 = scmp.ne.s32.totalorder %s47_s28, %s632_s15  ;;  %p638_p7 = scmp.lt.s32.totalorder %s632_s15, %s632_s15 }
  0x2d   :  { %p639_p8 = por %p638_p7, %p637_p6 }
  0x2f   :  { %p640_p9 = pnand %p639_p8, %p633_p5 }
  0x31   :  { %643 = shalt.err (!%p640_p9)
}
  0x32   :  { %s677_s0 = smov 64   ;;  %s678_s27 = smov 4  }
  0x33   :  { %52 = dma.hbm_to_vmem [thread:$0]  %s810_s3, 2048, %s47_s28, [#allocation6], %s677_s0, %s677_s0, %s678_s27  }
  0x34   :  { %666 = dma.done.wait [#allocation3], 256  }
  0x35   :  { %667 = vsyncadd [#allocation3], 4294967040 }
  0x36   :  { %668 = dma.done.wait [#allocation6], 4096  }
  0x37   :  { %669 = vsyncadd [#allocation6], 4294963200  ;;  %v69_v0 = vld [vmem:[#allocation2] sm:$0xff]  ;;  %v70_v1 = vld [vmem:[#allocation2 + $0x8] sm:$0xff]  ;;  %v679_v21 = vmov 0   ;;  %v131_v60 = vlaneseq  ;;  %s680_s22 = smov [#allocation8]  }
  0x38   :  { %71 = vadd.xlane.f32.xlu0 %v69_v0  ;;  %v534_v2 = vld [vmem:[#allocation5 + $0x4] ss:$8 sps:$4 sm:$0xff]   ;;  %v536_v3 = vld [vmem:[#allocation5] ss:$8 sps:$4 sm:$0xff]   ;;  %v537_v4 = vld [vmem:[#allocation5 + $0x14] ss:$8 sps:$4 sm:$0xff]   ;;  %253 = vmatprep.mubr.bf16.mxu0 %v679_v21 }
  0x39   :  { %221 = vmatprep.subr.bf16.mxu0 %v534_v2  ;;  %v539_v13 = vld [vmem:[#allocation5 + $0x10] ss:$8 sps:$4 sm:$0xff]   ;;  %v540_v14 = vld [vmem:[#allocation5 + $0x24] ss:$8 sps:$4 sm:$0xff]   ;;  %v542_v15 = vld [vmem:[#allocation5 + $0x20] ss:$8 sps:$4 sm:$0xff]  }
  0x3a   :  { %222 = vmatpush1.bf16.msra.mxu0 %v536_v3  ;;  %v543_v16 = vld [vmem:[#allocation5 + $0x34] ss:$8 sps:$4 sm:$0xff]   ;;  %v545_v17 = vld [vmem:[#allocation5 + $0x30] ss:$8 sps:$4 sm:$0xff]   ;;  %v546_v18 = vld [vmem:[#allocation5 + $0x44] ss:$8 sps:$4 sm:$0xff]  }
  0x3b   :  { %223 = vmatprep.subr.bf16.mxu0 %v537_v4  ;;  %v548_v19 = vld [vmem:[#allocation5 + $0x40] ss:$8 sps:$4 sm:$0xff]   ;;  %v549_v20 = vld [vmem:[#allocation5 + $0x54] ss:$8 sps:$4 sm:$0xff]   ;;  %v551_v22 = vld [vmem:[#allocation5 + $0x50] ss:$8 sps:$4 sm:$0xff]  }
  0x3c   :  { %73 = vadd.xlane.f32.xlu0 %v70_v1  ;;  %v552_v23 = vld [vmem:[#allocation5 + $0x64] ss:$8 sps:$4 sm:$0xff]   ;;  %v554_v24 = vld [vmem:[#allocation5 + $0x60] ss:$8 sps:$4 sm:$0xff]   ;;  %v555_v25 = vld [vmem:[#allocation5 + $0x74] ss:$8 sps:$4 sm:$0xff]  }
  0x3d   :  { %v557_v26 = vld [vmem:[#allocation5 + $0x70] ss:$8 sps:$4 sm:$0xff]   ;;  %v558_v27 = vld [vmem:[#allocation7 + $0x40] sm:$0xff]   ;;  %v560_v29 = vld [vmem:[#allocation7 + $0x48] sm:$0xff]   ;;  %v132_v61 = vshrl.u32 %v131_v60, 7  ;;  %s455_s23 = sshll.u32 %s680_s22, 4  ;;  %s456_s23 = int_to_ptr.vmem [resolvable:$true] %s455_s23 }
  0x3e   :  { %224 = vmatpush1.bf16.msra.mxu0 %v539_v13  ;;  %v559_v28 = vld [vmem:[#allocation7] sm:$0xff]   ;;  %503 = vmatprep.subr.bf16.mxu1 %v558_v27  ;;  %v561_v30 = vld [vmem:[#allocation7 + $0x8] sm:$0xff]   ;;  %v562_v31 = vld [vmem:[#allocation7 + $0x50] sm:$0xff]   ;;  %s644_s24 = scalar_lea.vmem %s456_s23, 256  ;;  %p649_p11 = scmp.lt.s32.totalorder %s456_s23, %s456_s23 }
  0x3f   :  { %225 = vmatprep.subr.bf16.mxu0 %v540_v14  ;;  %504 = vmatpush3.bf16.msra.mxu1 %v559_v28  ;;  %v563_v32 = vld [vmem:[#allocation7 + $0x10] sm:$0xff]   ;;  %v564_v33 = vld [vmem:[#allocation7 + $0x58] sm:$0xff]   ;;  %v566_v35 = vld [vmem:[#allocation7 + $0x60] sm:$0xff]   ;;  %v133_v62 = vsub.s32 0, %v132_v61  ;;  %p645_p10 = scmp.ne.s32.totalorder %s456_s23, %s644_s24  ;;  %p650_p12 = scmp.lt.s32.totalorder %s644_s24, %s644_s24 }
  0x40   :  { %505 = vmatprep.subr.bf16.mxu1 %v560_v29  ;;  %v565_v34 = vld [vmem:[#allocation7 + $0x18] sm:$0xff]   ;;  %v567_v36 = vld [vmem:[#allocation7 + $0x20] sm:$0xff]   ;;  %v568_v37 = vld [vmem:[#allocation7 + $0x68] sm:$0xff]  }
  0x41   :  { %v468_v46 = vld [vmem:[%s812_s5] ss:$0 sm:$0xff]  ;;  %v569_v55 = vld [vmem:[#allocation7 + $0x28] sm:$0xff]   ;;  %v572_v58 = vld [vmem:[#allocation7 + $0x78] sm:$0xff]   ;;  %p651_p13 = por %p650_p12, %p649_p11 }
  0x42   :  { %226 = vmatpush1.bf16.msra.mxu0 %v542_v15  ;;  %v469_v50 = vld [vmem:[%s813_s6] ss:$0 sm:$0xff]  ;;  %v573_v59 = vld [vmem:[#allocation7 + $0x38] sm:$0xff]  }
  0x43   :  { %227 = vmatprep.subr.bf16.mxu0 %v543_v16  ;;  %506 = vmatpush3.bf16.msra.mxu1 %v561_v30  ;;  %v570_v56 = vld [vmem:[#allocation7 + $0x70] sm:$0xff]   ;;  %p652_p0 = pnand %p651_p13, %p645_p10 }
  0x44   :  { %507 = vmatprep.subr.bf16.mxu1 %v562_v31  ;;  %v571_v57 = vld [vmem:[#allocation7 + $0x30] sm:$0xff]  }
  0x45   :  { %v129_v63 = vld [vmem:[%s809_s2] sm:$0x3] }
  0x46   :  { %228 = vmatpush1.bf16.msra.mxu0 %v545_v17 }
  0x47   :  { %229 = vmatprep.subr.bf16.mxu0 %v546_v18  ;;  %508 = vmatpush3.bf16.msra.mxu1 %v563_v32  ;;  %v486_v18 = vld [vmem:[%s811_s4] ss:$0 sm:$0xff] }
  0x48   :  { %509 = vmatprep.subr.bf16.mxu1 %v564_v33 }
  0x4a   :  { %230 = vmatpush1.bf16.msra.mxu0 %v548_v19 }
  0x4b   :  { %231 = vmatprep.subr.bf16.mxu0 %v549_v20  ;;  %510 = vmatpush3.bf16.msra.mxu1 %v565_v34 }
  0x4c   :  { %511 = vmatprep.subr.bf16.mxu1 %v566_v35 }
  0x4e   :  { %232 = vmatpush1.bf16.msra.mxu0 %v551_v22 }
  0x4f   :  { %233 = vmatprep.subr.bf16.mxu0 %v552_v23  ;;  %512 = vmatpush3.bf16.msra.mxu1 %v567_v36 }
  0x50   :  { %513 = vmatprep.subr.bf16.mxu1 %v568_v37 }
  0x52   :  { %234 = vmatpush1.bf16.msra.mxu0 %v554_v24 }
  0x53   :  { %235 = vmatprep.subr.bf16.mxu0 %v555_v25  ;;  %514 = vmatpush3.bf16.msra.mxu1 %v569_v55 }
  0x54   :  { %515 = vmatprep.subr.bf16.mxu1 %v570_v56 }
  0x56   :  { %236 = vmatpush1.bf16.msra.mxu0 %v557_v26 }
  0x57   :  { %516 = vmatpush3.bf16.msra.mxu1 %v571_v57 }
  0x58   :  { %517 = vmatprep.subr.bf16.mxu1 %v572_v58 }
  0x5b   :  { %518 = vmatpush3.bf16.msra.mxu1 %v573_v59 }
  0xc5   :  { %v72_v5 = vpop.xlane.xlu0 %71 }
  0xc6   :  { %v76_v6 = vmul.f32 0.0078125, %v72_v5 }
  0xc8   :  { %v770_v7 = vsub.f32 %v69_v0, %v76_v6  ;;  %v137_v0 = vsub.s32 1, %v132_v61 }
  0xc9   :  { %v74_v8 = vpop.xlane.xlu0 %73 }
  0xca   :  { %v77_v9 = vmul.f32 0.0078125, %v74_v8  ;;  %v80_v10 = vmul.f32 %v770_v7, %v770_v7  ;;  %v138_v2 = vrot.slane %v129_v63, %v137_v0 }
  0xcc   :  { %v774_v11 = vsub.f32 %v70_v1, %v77_v9  ;;  %82 = vadd.xlane.f32.xlu1 %v80_v10  ;;  %v134_v1 = vrot.slane %v129_v63, %v133_v62 }
  0xce   :  { %v81_v12 = vmul.f32 %v774_v11, %v774_v11 }
  0xd0   :  { %84 = vadd.xlane.f32.xlu1 %v81_v12 }
 0x159   :  { %v83_v38 = vpop.xlane.xlu1 %82 }
 0x15a   :  { %v86_v39 = vmul.f32 0.0078125, %v83_v38 }
 0x15c   :  { %v88_v40 = vadd.f32 1e-05, %v86_v39 }
 0x15d   :  { %v85_v41 = vpop.xlane.xlu1 %84 }
 0x15e   :  { %574 = vrsqrt.f32 %v88_v40  ;;  %v87_v42 = vmul.f32 0.0078125, %v85_v41 }
 0x160   :  { %v89_v43 = vadd.f32 1e-05, %v87_v42 }
 0x162   :  { %576 = vrsqrt.f32 %v89_v43 }
 0x168   :  { %v575_v44 = vpop.eup %574 }
 0x169   :  { %v92_v45 = vmul.f32 %v575_v44, %v770_v7 }
 0x16b   :  { %v101_v49 = vmul.f32 %v468_v46, %v92_v45 }
 0x16c   :  { %v577_v47 = vpop.eup %576 }
 0x16d   :  { %v93_v48 = vmul.f32 %v577_v47, %v774_v11  ;;  %v110_v52 = vadd.f32 %v469_v50, %v101_v49 }
 0x16f   :  { %v102_v51 = vmul.f32 %v468_v46, %v93_v48 }
 0x171   :  { %v111_v53 = vadd.f32 %v469_v50, %v102_v51 }
 0x173   :  { %v112_v54 = vpack.c.bf16 %v111_v53, %v110_v52 }
 0x175   :  { %254 = vmatmul.mubr.bf16.vlgmr.msra.gmra.mrb[0].mxu0 %v112_v54 }
 0x248   :  { %v255_v3 = vpop.f32.mrb[0].mxu0 }
 0x249   :  { %v256_v4 = vadd.f32 %v255_v3, %v134_v1  ;;  %v257_v5 = vpop.f32.mrb[1].mxu0 }
 0x24a   :  { %v258_v6 = vadd.f32 %v257_v5, %v138_v2  ;;  %v259_v7 = vpop.f32.mrb[2].mxu0 }
 0x24b   :  { %v260_v8 = vadd.f32 %v259_v7, %v134_v1  ;;  %v261_v9 = vpop.f32.mrb[3].mxu0  ;;  %v264_v11 = vmax.f32 %v256_v4, 0.0 }
 0x24c   :  { %v262_v10 = vadd.f32 %v261_v9, %v138_v2  ;;  %v265_v13 = vmax.f32 %v258_v6, 0.0 }
 0x24d   :  { %v266_v12 = vmax.f32 %v260_v8, 0.0 }
 0x24e   :  { %v267_v14 = vmax.f32 %v262_v10, 0.0 }
 0x24f   :  { %v268_v15 = vpack.c.bf16 %v266_v12, %v264_v11 }
 0x250   :  { %v269_v16 = vpack.c.bf16 %v267_v14, %v265_v13 }
 0x252   :  { %437 = vmatprep.mubr.bf16.mxu1 %v269_v16 }
 0x253   :  { %438 = vmatmul.mubr.bf16.vlgmr.msra.gmra.mrb[0].mxu1 %v268_v15 }
 0x326   :  { %v519_v17 = vpop.f32.mrb[0].mxu1 }
 0x327   :  { %v520_v19 = vpop.f32.mrb[1].mxu1 }
 0x328   :  { %v521_v20 = vadd.f32 %v520_v19, %v519_v17  ;;  %v522_v21 = vpop.f32.mrb[2].mxu1 }
 0x329   :  { %v523_v22 = vpop.f32.mrb[3].mxu1 }
 0x32a   :  { %v440_v23 = vadd.f32 %v521_v20, %v486_v18  ;;  %v524_v24 = vadd.f32 %v523_v22, %v522_v21 }
 0x32c   :  { %v446_v25 = vadd.f32 %v440_v23, %v110_v52  ;;  %v443_v26 = vadd.f32 %v524_v24, %v486_v18 }
 0x32e   :  { %448 = vst [vmem:[#allocation8] sm:$0xff] %v446_v25  ;;  %v447_v27 = vadd.f32 %v443_v26, %v111_v53 }
 0x330   :  { %449 = vst [vmem:[#allocation8 + $0x8] sm:$0xff] %v447_v27 }
 0x331   :  { %655 = shalt.err (!%p652_p0)
}
 0x332   :  { %s656_s25 = scalar_lea.hbm %s814_s7, 256 }
 0x333   :  { %p657_p1 = scmp.ne.s32.totalorder %s814_s7, %s656_s25  ;;  %p660_p2 = scmp.lt.u32.totalorder %s656_s25, %s814_s7 }
 0x335   :  { %p662_p3 = pnand %p660_p2, %p657_p1 }
 0x337   :  { %665 = shalt.err (!%p662_p3)
}
 0x338   :  { %461 = dma.vmem_to_hbm [thread:$0]  %s456_s23, 256, %s814_s7, [#allocation4], %s674_s13, %s674_s13, %s675_s14  }
 0x339   :  { %670 = dma.done.wait [#allocation4], 256  }
 0x33a   :  { %671 = vsyncadd [#allocation4], 4294967040 }
 0x33b   :  { %465 = vsyncpa [#allocation3], 1 }
 0x33c   :  { %466 = vsyncpa [#allocation6], 1 }
 0x33d   :  { %467 = vsyncpa [#allocation4], 1 }

// kernel: tpu_custom_call.1
= control target key start
LH: loop header
LB: loop body
LE: loop exit
PB: predicated region body
PF: predicated region fallthrough
CT: control target
= control target key end

     0   :  { %12 = vsyncpa [#allocation3], 0  ;;  %s807_s0 = inlined_call_operand.hbm [shape: f32[16,128], index: 0, kind: input, shape index: {}]   ;;  %s808_s1 = inlined_call_operand.hbm [shape: bf16[128,256], index: 1, kind: input, shape index: {}]   ;;  %s809_s2 = inlined_call_operand.vmem [shape: f32[1,256], index: 2, kind: input, shape index: {}]   ;;  %s810_s3 = inlined_call_operand.hbm [shape: bf16[256,128], index: 3, kind: input, shape index: {}]   ;;  %s811_s4 = inlined_call_operand.vmem [shape: f32[1,128], index: 4, kind: input, shape index: {}]   ;;  %s812_s5 = inlined_call_operand.vmem [shape: f32[1,128], index: 5, kind: input, shape index: {}]   ;;  %s813_s6 = inlined_call_operand.vmem [shape: f32[1,128], index: 6, kind: input, shape index: {}]   ;;  %s814_s7 = inlined_call_operand.hbm [shape: f32[16,128], index: 7, kind: output, shape index: {}]  }
   0x1   :  { %13 = vsyncpa [#allocation6], 0 }
   0x2   :  { %14 = vsyncpa [#allocation4], 0  ;;  %s672_s24 = smov [#allocation5]   ;;  %s673_s26 = smov [#allocation2]  }
   0x3   :  { %s32_s25 = sshll.u32 %s672_s24, 4  ;;  %s20_s27 = sshll.u32 %s673_s26, 4  ;;  %s33_s25 = int_to_ptr.vmem [resolvable:$true] %s32_s25  ;;  %s721_s27 = int_to_ptr.vmem [resolvable:$true] %s20_s27 }
   0x4   :  { %s578_s30 = scalar_lea.hbm %s808_s1, 2048 }
   0x5   :  { %p579_p0 = scmp.ne.s32.totalorder %s808_s1, %s578_s30  ;;  %p582_p1 = scmp.lt.u32.totalorder %s578_s30, %s808_s1 }
   0x7   :  { %p584_p2 = pnand %p582_p1, %p579_p0 }
   0x9   :  { %587 = shalt.err (!%p584_p2)
}
   0xa   :  { %s588_s12 = scalar_lea.vmem %s33_s25, 2048  ;;  %p593_p4 = scmp.lt.s32.totalorder %s33_s25, %s33_s25 }
   0xb   :  { %p589_p3 = scmp.ne.s32.totalorder %s33_s25, %s588_s12  ;;  %p594_p5 = scmp.lt.s32.totalorder %s588_s12, %s588_s12 }
   0xd   :  { %p595_p6 = por %p594_p5, %p593_p4 }
   0xf   :  { %p596_p7 = pnand %p595_p6, %p589_p3 }
  0x11   :  { %599 = shalt.err (!%p596_p7)
}
  0x12   :  { %s674_s13 = smov 128   ;;  %s675_s14 = smov 8  }
  0x13   :  { %38 = dma.hbm_to_vmem [thread:$0]  %s808_s1, 2048, %s33_s25, [#allocation6], %s674_s13, %s674_s13, %s675_s14  }
  0x14   :  { %s600_s19 = scalar_lea.hbm %s807_s0, 256 }
  0x15   :  { %p601_p8 = scmp.ne.s32.totalorder %s807_s0, %s600_s19  ;;  %p604_p9 = scmp.lt.u32.totalorder %s600_s19, %s807_s0 }
  0x17   :  { %p606_p10 = pnand %p604_p9, %p601_p8 }
  0x19   :  { %609 = shalt.err (!%p606_p10)
}
  0x1a   :  { %s610_s24 = scalar_lea.vmem %s721_s27, 256  ;;  %p615_p12 = scmp.lt.s32.totalorder %s721_s27, %s721_s27 }
  0x1b   :  { %p611_p11 = scmp.ne.s32.totalorder %s721_s27, %s610_s24  ;;  %p616_p13 = scmp.lt.s32.totalorder %s610_s24, %s610_s24 }
  0x1d   :  { %p617_p0 = por %p616_p13, %p615_p12 }
  0x1f   :  { %p618_p1 = pnand %p617_p0, %p611_p11 }
  0x21   :  { %621 = shalt.err (!%p618_p1)
}
  0x22   :  { %26 = dma.hbm_to_vmem [thread:$0]  %s807_s0, 256, %s721_s27, [#allocation3], %s674_s13, %s674_s13, %s675_s14  }
  0x23   :  { %s676_s26 = smov [#allocation7]   ;;  %s622_s8 = scalar_lea.hbm %s810_s3, 2048 }
  0x24   :  { %s46_s28 = sshll.u32 %s676_s26, 4  ;;  %p623_p2 = scmp.ne.s32.totalorder %s810_s3, %s622_s8  ;;  %s47_s28 = int_to_ptr.vmem [resolvable:$true] %s46_s28 }
  0x25   :  { %p626_p3 = scmp.lt.u32.totalorder %s622_s8, %s810_s3 }
  0x27   :  { %p628_p4 = pnand %p626_p3, %p623_p2 }
  0x29   :  { %631 = shalt.err (!%p628_p4)
}
  0x2a   :  { %s632_s15 = scalar_lea.vmem %s47_s28, 2048  ;;  %p637_p6 = scmp.lt.s32.totalorder %s47_s28, %s47_s28 }
  0x2b   :  { %p633_p5 = scmp.ne.s32.totalorder %s47_s28, %s632_s15  ;;  %p638_p7 = scmp.lt.s32.totalorder %s632_s15, %s632_s15 }
  0x2d   :  { %p639_p8 = por %p638_p7, %p637_p6 }
  0x2f   :  { %p640_p9 = pnand %p639_p8, %p633_p5 }
  0x31   :  { %643 = shalt.err (!%p640_p9)
}
  0x32   :  { %s677_s0 = smov 64   ;;  %s678_s27 = smov 4  }
  0x33   :  { %52 = dma.hbm_to_vmem [thread:$0]  %s810_s3, 2048, %s47_s28, [#allocation6], %s677_s0, %s677_s0, %s678_s27  }
  0x34   :  { %666 = dma.done.wait [#allocation3], 256  }
  0x35   :  { %667 = vsyncadd [#allocation3], 4294967040 }
  0x36   :  { %668 = dma.done.wait [#allocation6], 4096  }
  0x37   :  { %669 = vsyncadd [#allocation6], 4294963200  ;;  %v69_v0 = vld [vmem:[#allocation2] sm:$0xff]  ;;  %v70_v1 = vld [vmem:[#allocation2 + $0x8] sm:$0xff]  ;;  %v679_v21 = vmov 0   ;;  %v131_v60 = vlaneseq  ;;  %s680_s22 = smov [#allocation8]  }
  0x38   :  { %71 = vadd.xlane.f32.xlu0 %v69_v0  ;;  %v534_v2 = vld [vmem:[#allocation5 + $0x4] ss:$8 sps:$4 sm:$0xff]   ;;  %v536_v3 = vld [vmem:[#allocation5] ss:$8 sps:$4 sm:$0xff]   ;;  %v537_v4 = vld [vmem:[#allocation5 + $0x14] ss:$8 sps:$4 sm:$0xff]   ;;  %253 = vmatprep.mubr.bf16.mxu0 %v679_v21 }
  0x39   :  { %221 = vmatprep.subr.bf16.mxu0 %v534_v2  ;;  %v539_v13 = vld [vmem:[#allocation5 + $0x10] ss:$8 sps:$4 sm:$0xff]   ;;  %v540_v14 = vld [vmem:[#allocation5 + $0x24] ss:$8 sps:$4 sm:$0xff]   ;;  %v542_v15 = vld [vmem:[#allocation5 + $0x20] ss:$8 sps:$4 sm:$0xff]  }
  0x3a   :  { %222 = vmatpush1.bf16.msra.mxu0 %v536_v3  ;;  %v543_v16 = vld [vmem:[#allocation5 + $0x34] ss:$8 sps:$4 sm:$0xff]   ;;  %v545_v17 = vld [vmem:[#allocation5 + $0x30] ss:$8 sps:$4 sm:$0xff]   ;;  %v546_v18 = vld [vmem:[#allocation5 + $0x44] ss:$8 sps:$4 sm:$0xff]  }
  0x3b   :  { %223 = vmatprep.subr.bf16.mxu0 %v537_v4  ;;  %v548_v19 = vld [vmem:[#allocation5 + $0x40] ss:$8 sps:$4 sm:$0xff]   ;;  %v549_v20 = vld [vmem:[#allocation5 + $0x54] ss:$8 sps:$4 sm:$0xff]   ;;  %v551_v22 = vld [vmem:[#allocation5 + $0x50] ss:$8 sps:$4 sm:$0xff]  }
  0x3c   :  { %73 = vadd.xlane.f32.xlu0 %v70_v1  ;;  %v552_v23 = vld [vmem:[#allocation5 + $0x64] ss:$8 sps:$4 sm:$0xff]   ;;  %v554_v24 = vld [vmem:[#allocation5 + $0x60] ss:$8 sps:$4 sm:$0xff]   ;;  %v555_v25 = vld [vmem:[#allocation5 + $0x74] ss:$8 sps:$4 sm:$0xff]  }
  0x3d   :  { %v557_v26 = vld [vmem:[#allocation5 + $0x70] ss:$8 sps:$4 sm:$0xff]   ;;  %v558_v27 = vld [vmem:[#allocation7 + $0x40] sm:$0xff]   ;;  %v560_v29 = vld [vmem:[#allocation7 + $0x48] sm:$0xff]   ;;  %v132_v61 = vshrl.u32 %v131_v60, 7  ;;  %s455_s23 = sshll.u32 %s680_s22, 4  ;;  %s456_s23 = int_to_ptr.vmem [resolvable:$true] %s455_s23 }
  0x3e   :  { %224 = vmatpush1.bf16.msra.mxu0 %v539_v13  ;;  %v559_v28 = vld [vmem:[#allocation7] sm:$0xff]   ;;  %503 = vmatprep.subr.bf16.mxu1 %v558_v27  ;;  %v561_v30 = vld [vmem:[#allocation7 + $0x8] sm:$0xff]   ;;  %v562_v31 = vld [vmem:[#allocation7 + $0x50] sm:$0xff]   ;;  %s644_s24 = scalar_lea.vmem %s456_s23, 256  ;;  %p649_p11 = scmp.lt.s32.totalorder %s456_s23, %s456_s23 }
  0x3f   :  { %225 = vmatprep.subr.bf16.mxu0 %v540_v14  ;;  %504 = vmatpush3.bf16.msra.mxu1 %v559_v28  ;;  %v563_v32 = vld [vmem:[#allocation7 + $0x10] sm:$0xff]   ;;  %v564_v33 = vld [vmem:[#allocation7 + $0x58] sm:$0xff]   ;;  %v566_v35 = vld [vmem:[#allocation7 + $0x60] sm:$0xff]   ;;  %v133_v62 = vsub.s32 0, %v132_v61  ;;  %p645_p10 = scmp.ne.s32.totalorder %s456_s23, %s644_s24  ;;  %p650_p12 = scmp.lt.s32.totalorder %s644_s24, %s644_s24 }
  0x40   :  { %505 = vmatprep.subr.bf16.mxu1 %v560_v29  ;;  %v565_v34 = vld [vmem:[#allocation7 + $0x18] sm:$0xff]   ;;  %v567_v36 = vld [vmem:[#allocation7 + $0x20] sm:$0xff]   ;;  %v568_v37 = vld [vmem:[#allocation7 + $0x68] sm:$0xff]  }
  0x41   :  { %v468_v46 = vld [vmem:[%s812_s5] ss:$0 sm:$0xff]  ;;  %v569_v55 = vld [vmem:[#allocation7 + $0x28] sm:$0xff]   ;;  %v572_v58 = vld [vmem:[#allocation7 + $0x78] sm:$0xff]   ;;  %p651_p13 = por %p650_p12, %p649_p11 }
  0x42   :  { %226 = vmatpush1.bf16.msra.mxu0 %v542_v15  ;;  %v469_v50 = vld [vmem:[%s813_s6] ss:$0 sm:$0xff]  ;;  %v573_v59 = vld [vmem:[#allocation7 + $0x38] sm:$0xff]  }
  0x43   :  { %227 = vmatprep.subr.bf16.mxu0 %v543_v16  ;;  %506 = vmatpush3.bf16.msra.mxu1 %v561_v30  ;;  %v570_v56 = vld [vmem:[#allocation7 + $0x70] sm:$0xff]   ;;  %p652_p0 = pnand %p651_p13, %p645_p10 }
  0x44   :  { %507 = vmatprep.subr.bf16.mxu1 %v562_v31  ;;  %v571_v57 = vld [vmem:[#allocation7 + $0x30] sm:$0xff]  }
  0x45   :  { %v129_v63 = vld [vmem:[%s809_s2] sm:$0x3] }
  0x46   :  { %228 = vmatpush1.bf16.msra.mxu0 %v545_v17 }
  0x47   :  { %229 = vmatprep.subr.bf16.mxu0 %v546_v18  ;;  %508 = vmatpush3.bf16.msra.mxu1 %v563_v32  ;;  %v486_v18 = vld [vmem:[%s811_s4] ss:$0 sm:$0xff] }
  0x48   :  { %509 = vmatprep.subr.bf16.mxu1 %v564_v33 }
  0x4a   :  { %230 = vmatpush1.bf16.msra.mxu0 %v548_v19 }
  0x4b   :  { %231 = vmatprep.subr.bf16.mxu0 %v549_v20  ;;  %510 = vmatpush3.bf16.msra.mxu1 %v565_v34 }
  0x4c   :  { %511 = vmatprep.subr.bf16.mxu1 %v566_v35 }
  0x4e   :  { %232 = vmatpush1.bf16.msra.mxu0 %v551_v22 }
  0x4f   :  { %233 = vmatprep.subr.bf16.mxu0 %v552_v23  ;;  %512 = vmatpush3.bf16.msra.mxu1 %v567_v36 }
  0x50   :  { %513 = vmatprep.subr.bf16.mxu1 %v568_v37 }
  0x52   :  { %234 = vmatpush1.bf16.msra.mxu0 %v554_v24 }
  0x53   :  { %235 = vmatprep.subr.bf16.mxu0 %v555_v25  ;;  %514 = vmatpush3.bf16.msra.mxu1 %v569_v55 }
  0x54   :  { %515 = vmatprep.subr.bf16.mxu1 %v570_v56 }
  0x56   :  { %236 = vmatpush1.bf16.msra.mxu0 %v557_v26 }
  0x57   :  { %516 = vmatpush3.bf16.msra.mxu1 %v571_v57 }
  0x58   :  { %517 = vmatprep.subr.bf16.mxu1 %v572_v58 }
  0x5b   :  { %518 = vmatpush3.bf16.msra.mxu1 %v573_v59 }
  0xc5   :  { %v72_v5 = vpop.xlane.xlu0 %71 }
  0xc6   :  { %v76_v6 = vmul.f32 0.0078125, %v72_v5 }
  0xc8   :  { %v770_v7 = vsub.f32 %v69_v0, %v76_v6  ;;  %v137_v0 = vsub.s32 1, %v132_v61 }
  0xc9   :  { %v74_v8 = vpop.xlane.xlu0 %73 }
  0xca   :  { %v77_v9 = vmul.f32 0.0078125, %v74_v8  ;;  %v80_v10 = vmul.f32 %v770_v7, %v770_v7  ;;  %v138_v2 = vrot.slane %v129_v63, %v137_v0 }
  0xcc   :  { %v774_v11 = vsub.f32 %v70_v1, %v77_v9  ;;  %82 = vadd.xlane.f32.xlu1 %v80_v10  ;;  %v134_v1 = vrot.slane %v129_v63, %v133_v62 }
  0xce   :  { %v81_v12 = vmul.f32 %v774_v11, %v774_v11 }
  0xd0   :  { %84 = vadd.xlane.f32.xlu1 %v81_v12 }
 0x159   :  { %v83_v38 = vpop.xlane.xlu1 %82 }
 0x15a   :  { %v86_v39 = vmul.f32 0.0078125, %v83_v38 }
 0x15c   :  { %v88_v40 = vadd.f32 1e-05, %v86_v39 }
 0x15d   :  { %v85_v41 = vpop.xlane.xlu1 %84 }
 0x15e   :  { %574 = vrsqrt.f32 %v88_v40  ;;  %v87_v42 = vmul.f32 0.0078125, %v85_v41 }
 0x160   :  { %v89_v43 = vadd.f32 1e-05, %v87_v42 }
 0x162   :  { %576 = vrsqrt.f32 %v89_v43 }
 0x168   :  { %v575_v44 = vpop.eup %574 }
 0x169   :  { %v92_v45 = vmul.f32 %v575_v44, %v770_v7 }
 0x16b   :  { %v101_v49 = vmul.f32 %v468_v46, %v92_v45 }
 0x16c   :  { %v577_v47 = vpop.eup %576 }
 0x16d   :  { %v93_v48 = vmul.f32 %v577_v47, %v774_v11  ;;  %v110_v52 = vadd.f32 %v469_v50, %v101_v49 }
 0x16f   :  { %v102_v51 = vmul.f32 %v468_v46, %v93_v48 }
 0x171   :  { %v111_v53 = vadd.f32 %v469_v50, %v102_v51 }
 0x173   :  { %v112_v54 = vpack.c.bf16 %v111_v53, %v110_v52 }
 0x175   :  { %254 = vmatmul.mubr.bf16.vlgmr.msra.gmra.mrb[0].mxu0 %v112_v54 }
 0x248   :  { %v255_v3 = vpop.f32.mrb[0].mxu0 }
 0x249   :  { %v256_v4 = vadd.f32 %v255_v3, %v134_v1  ;;  %v257_v5 = vpop.f32.mrb[1].mxu0 }
 0x24a   :  { %v258_v6 = vadd.f32 %v257_v5, %v138_v2  ;;  %v259_v7 = vpop.f32.mrb[2].mxu0 }
 0x24b   :  { %v260_v8 = vadd.f32 %v259_v7, %v134_v1  ;;  %v261_v9 = vpop.f32.mrb[3].mxu0  ;;  %v264_v11 = vmax.f32 %v256_v4, 0.0 }
 0x24c   :  { %v262_v10 = vadd.f32 %v261_v9, %v138_v2  ;;  %v265_v13 = vmax.f32 %v258_v6, 0.0 }
 0x24d   :  { %v266_v12 = vmax.f32 %v260_v8, 0.0 }
 0x24e   :  { %v267_v14 = vmax.f32 %v262_v10, 0.0 }
 0x24f   :  { %v268_v15 = vpack.c.bf16 %v266_v12, %v264_v11 }
 0x250   :  { %v269_v16 = vpack.c.bf16 %v267_v14, %v265_v13 }
 0x252   :  { %437 = vmatprep.mubr.bf16.mxu1 %v269_v16 }
 0x253   :  { %438 = vmatmul.mubr.bf16.vlgmr.msra.gmra.mrb[0].mxu1 %v268_v15 }
 0x326   :  { %v519_v17 = vpop.f32.mrb[0].mxu1 }
 0x327   :  { %v520_v19 = vpop.f32.mrb[1].mxu1 }
 0x328   :  { %v521_v20 = vadd.f32 %v520_v19, %v519_v17  ;;  %v522_v21 = vpop.f32.mrb[2].mxu1 }
 0x329   :  { %v523_v22 = vpop.f32.mrb[3].mxu1 }
 0x32a   :  { %v440_v23 = vadd.f32 %v521_v20, %v486_v18  ;;  %v524_v24 = vadd.f32 %v523_v22, %v522_v21 }
 0x32c   :  { %v446_v25 = vadd.f32 %v440_v23, %v110_v52  ;;  %v443_v26 = vadd.f32 %v524_v24, %v486_v18 }
 0x32e   :  { %448 = vst [vmem:[#allocation8] sm:$0xff] %v446_v25  ;;  %v447_v27 = vadd.f32 %v443_v26, %v111_v53 }
 0x330   :  { %449 = vst [vmem:[#allocation8 + $0x8] sm:$0xff] %v447_v27 }
 0x331   :  { %655 = shalt.err (!%p652_p0)
}
 0x332   :  { %s656_s25 = scalar_lea.hbm %s814_s7, 256 }
 0x333   :  { %p657_p1 = scmp.ne.s32.totalorder %s814_s7, %s656_s25  ;;  %p660_p2 = scmp.lt.u32.totalorder %s656_s25, %s814_s7 }
 0x335   :  { %p662_p3 = pnand %p660_p2, %p657_p1 }
 0x337   :  { %665 = shalt.err (!%p662_p3)
}
 0x338   :  { %461 = dma.vmem_to_hbm [thread:$0]  %s456_s23, 256, %s814_s7, [#allocation4], %s674_s13, %s674_s13, %s675_s14  }
 0x339   :  { %670 = dma.done.wait [#allocation4], 256  }
 0x33a   :  { %671 = vsyncadd [#allocation4], 4294967040 }
 0x33b   :  { %465 = vsyncpa [#allocation3], 1 }
 0x33c   :  { %466 = vsyncpa [#allocation6], 1 }
 0x33d   :  { %467 = vsyncpa [#allocation4], 1 }

</bundles_post_ra>
